<compile_context>
chip_gen: v7x
topology: tpu7x:2x2x1
jax: 0.10.0
libtpu: 0.0.40
codegen_flags: <defaults>
</compile_context>

<pallas_src>
import jax
import jax.numpy as jnp
from jax.experimental import pallas as pl
from jax.experimental.pallas import tpu as pltpu


# ---------------------------------------------------------------------------
# Pallas kernel: one batch element per grid step.
# ---------------------------------------------------------------------------
def _unprocess_kernel(pos_ref, rot_ref, root_ref, vel_ref, pos_out_ref, rot_out_ref):
    # pos_ref  : (3, J, T)   positions, component-first, time on lanes
    # rot_ref  : (4, J, T)   joint rotations (w, x, y, z)
    # root_ref : (4, 1, T)   root rotation  (w, x, y, z)
    # vel_ref  : (3, T-1)    joint-0 global velocity
    f32 = jnp.float32
    t_m1 = vel_ref.shape[-1]

    # Inverse (= conjugate, unit quaternion) of the root rotation; planes are [1, T]
    # and broadcast over the J sublanes for free.
    root = root_ref[...]
    qw = root[0].astype(f32)
    qx = -(root[1].astype(f32))
    qy = -(root[2].astype(f32))
    qz = -(root[3].astype(f32))

    def rotate(vx, vy, vz, w, x, y, z):
        # quaternion_apply(q, v) for unit q: v + 2w (qv x v) + 2 qv x (qv x v)
        tx = 2.0 * (y * vz - z * vy)
        ty = 2.0 * (z * vx - x * vz)
        tz = 2.0 * (x * vy - y * vx)
        return (vx + w * tx + (y * tz - z * ty),
                vy + w * ty + (z * tx - x * tz),
                vz + w * tz + (x * ty - y * tx))

    # ---- glb_pos into the root-local frame (root broadcasts over joints) ----------
    pos = pos_ref[...]
    prx, pry, prz = rotate(pos[0].astype(f32), pos[1].astype(f32), pos[2].astype(f32),
                           qw, qx, qy, qz)                          # each [J, T]

    # ---- glb_rot = standardize(quaternion_multiply(inverse_root, glb_rot)) --------
    rot = rot_ref[...]
    bw = rot[0].astype(f32)
    bx = rot[1].astype(f32)
    by = rot[2].astype(f32)
    bz = rot[3].astype(f32)
    ow = qw * bw - qx * bx - qy * by - qz * bz
    ox = qw * bx + qx * bw + qy * bz - qz * by
    oy = qw * by - qx * bz + qy * bw + qz * bx
    oz = qw * bz + qx * by - qy * bx + qz * bw
    sgn = jnp.where(ow < 0.0, -1.0, 1.0)        # standardize_quaternion: force w >= 0
    rot_out_ref[0] = (sgn * ow).astype(rot_out_ref.dtype)
    rot_out_ref[1] = (sgn * ox).astype(rot_out_ref.dtype)
    rot_out_ref[2] = (sgn * oy).astype(rot_out_ref.dtype)
    rot_out_ref[3] = (sgn * oz).astype(rot_out_ref.dtype)

    # ---- root trajectory: only joint 0, only x/z ever reach the output ------------
    vel = vel_ref[...]                                              # (3, T-1)
    rvx, _, rvz = rotate(vel[0:1].astype(f32),
                         vel[1:2].astype(f32),
                         vel[2:3].astype(f32),
                         qw[:, :t_m1], qx[:, :t_m1], qy[:, :t_m1], qz[:, :t_m1])

    # Inclusive prefix sum over time (lane axis) via log-depth shifted adds on the VPU.
    # For much larger T this could be tiled over the grid with a carried prefix, but
    # the scan is O(T log T) on a tiny [2, T] slab, so it never matters here.
    acc = jnp.concatenate([rvx, rvz], axis=0)                       # [2, T-1]
    shift = 1
    while shift < t_m1:
        shifted = jnp.concatenate(
            [jnp.zeros((2, shift), f32), acc[:, :t_m1 - shift]], axis=-1)
        acc = acc + shifted
        shift *= 2
    # exclusive cumsum + base (rotated position of joint 0 at frame 0)
    cum = jnp.concatenate([jnp.zeros((2, 1), f32), acc], axis=-1)   # [2, T]
    traj_x = prx[0:1, 0:1] + cum[0:1, :]                            # [1, T]
    traj_z = prz[0:1, 0:1] + cum[1:2, :]

    # ---- glb_pos[..., [0, 2]] += root trajectory (y plane untouched) ---------------
    pos_out_ref[0] = (prx + traj_x).astype(pos_out_ref.dtype)
    pos_out_ref[1] = pry.astype(pos_out_ref.dtype)
    pos_out_ref[2] = (prz + traj_z).astype(pos_out_ref.dtype)


# ---------------------------------------------------------------------------
# Wrapper: layout plumbing (SoA transposes) + pallas_call, outputs in PyTorch layout.
# ---------------------------------------------------------------------------
def batch_unprocess_data_v2(glb_pos, glb_rot, glb_vel, root_rotation):
    B, T, J, _ = glb_rot.shape

    pos_cf = jnp.transpose(glb_pos, (0, 3, 2, 1))               # [B, 3, J, T]
    rot_cf = jnp.transpose(glb_rot, (0, 3, 2, 1))               # [B, 4, J, T]
    root_cf = jnp.transpose(root_rotation, (0, 3, 2, 1))        # [B, 4, 1, T]
    # Only joint 0 of out_pos is ever read -> only joint 0 of glb_vel matters.
    vel0_cf = jnp.transpose(glb_vel[:, :, 0, :], (0, 2, 1))     # [B, 3, T-1]

    pos_out_cf, rot_out_cf = pl.pallas_call(
        _unprocess_kernel,
        out_shape=(jax.ShapeDtypeStruct((B, 3, J, T), glb_pos.dtype),
                   jax.ShapeDtypeStruct((B, 4, J, T), glb_rot.dtype)),
        grid=(B,),
        in_specs=[pl.BlockSpec((None, 3, J, T), lambda b: (b, 0, 0, 0)),
                  pl.BlockSpec((None, 4, J, T), lambda b: (b, 0, 0, 0)),
                  pl.BlockSpec((None, 4, 1, T), lambda b: (b, 0, 0, 0)),
                  pl.BlockSpec((None, 3, T - 1), lambda b: (b, 0, 0))],
        out_specs=(pl.BlockSpec((None, 3, J, T), lambda b: (b, 0, 0, 0)),
                   pl.BlockSpec((None, 4, J, T), lambda b: (b, 0, 0, 0))),
        compiler_params=pltpu.CompilerParams(
            dimension_semantics=("parallel",),   # shard batches across TCs on v7x
            vmem_limit_bytes=32 * 1024 * 1024),
    )(pos_cf, rot_cf, root_cf, vel0_cf)

    glb_pos_out = jnp.transpose(pos_out_cf, (0, 3, 2, 1))       # [B, T, J, 3]
    glb_rot_out = jnp.transpose(rot_out_cf, (0, 3, 2, 1))       # [B, T, J, 4]
    return glb_pos_out, glb_rot_out


# ---------------------------------------------------------------------------
# Pure-JAX reference mirroring the PyTorch/pytorch3d code exactly.
# ---------------------------------------------------------------------------
def _quat_conj(q):
    return jnp.concatenate([q[..., 0:1], -q[..., 1:4]], axis=-1)


def _quat_raw_mul(a, b):
    aw, ax, ay, az = a[..., 0:1], a[..., 1:2], a[..., 2:3], a[..., 3:4]
    bw, bx, by, bz = b[..., 0:1], b[..., 1:2], b[..., 2:3], b[..., 3:4]
    return jnp.concatenate([
        aw * bw - ax * bx - ay * by - az * bz,
        aw * bx + ax * bw + ay * bz - az * by,
        aw * by - ax * bz + ay * bw + az * bx,
        aw * bz + ax * by - ay * bx + az * bw], axis=-1)


def _quat_apply_sandwich(q, p):
    p_q = jnp.concatenate([jnp.zeros_like(p[..., :1]), p], axis=-1)
    return _quat_raw_mul(_quat_raw_mul(q, p_q), _quat_conj(q))[..., 1:]


def reference(glb_pos, glb_rot, glb_vel, root_rotation):
    inv = _quat_conj(root_rotation)
    pos = _quat_apply_sandwich(inv, glb_pos)
    vel = _quat_apply_sandwich(inv[:, :-1], glb_vel)
    out_pos0 = pos[:, 0:1]
    out_pos = jnp.concatenate([out_pos0, out_pos0 + jnp.cumsum(vel, axis=1)], axis=1)
    rot = _quat_raw_mul(inv, glb_rot)
    rot = jnp.where(rot[..., 0:1] < 0.0, -rot, rot)   # standardize_quaternion
    mask = jnp.array([1.0, 0.0, 1.0], dtype=pos.dtype)
    pos = pos + out_pos[:, :, 0:1, :] * mask
    return pos, rot


if __name__ == "__main__":
    key = jax.random.PRNGKey(0)
    k1, k2, k3, k4 = jax.random.split(key, 4)
    B, T, J = 2, 8, 4

    glb_pos = jax.random.normal(k1, (B, T, J, 3), jnp.float32)
    glb_rot = jax.random.normal(k2, (B, T, J, 4), jnp.float32)
    glb_rot = glb_rot / jnp.linalg.norm(glb_rot, axis=-1, keepdims=True)
    glb_vel = 0.1 * jax.random.normal(k3, (B, T - 1, J, 3), jnp.float32)
    root_rotation = jax.random.normal(k4, (B, T, 1, 4), jnp.float32)
    root_rotation = root_rotation / jnp.linalg.norm(root_rotation, axis=-1, keepdims=True)

    fwd = jax.jit(batch_unprocess_data_v2)
    pos_out, rot_out = fwd(glb_pos, glb_rot, glb_vel, root_rotation)
    jax.block_until_ready((pos_out, rot_out))

    pos_ref, rot_ref = reference(glb_pos, glb_rot, glb_vel, root_rotation)
    assert pos_out.shape == (B, T, J, 3) and rot_out.shape == (B, T, J, 4)
    assert jnp.allclose(pos_out, pos_ref, atol=1e-4, rtol=1e-4), "glb_pos mismatch"
    assert jnp.allclose(rot_out, rot_ref, atol=1e-4, rtol=1e-4), "glb_rot mismatch"
    print("KERNEL_OK")
</pallas_src>

<mosaic_0001>
module attributes {stable_mosaic.version = 11 : i64} {
  func.func @_unprocess_kernel(%arg0: i32, %arg1: memref<1x3x4x8xf32, #tpu.memory_space<vmem>>, %arg2: memref<1x4x4x8xf32, #tpu.memory_space<vmem>>, %arg3: memref<1x4x1x8xf32, #tpu.memory_space<vmem>>, %arg4: memref<1x3x7xf32, #tpu.memory_space<vmem>>, %arg5: memref<1x3x4x8xf32, #tpu.memory_space<vmem>>, %arg6: memref<1x4x4x8xf32, #tpu.memory_space<vmem>>) attributes {dimension_semantics = [#tpu.dimension_semantics<parallel>], iteration_bounds = array<i64: 2>, scalar_prefetch = 0 : i64, scratch_operands = 0 : i64, tpu.core_type = #tpu.core_type<tc>, window_params = [{transform_indices = @transform_0, window_bounds = array<i64: 1, 3, 4, 8>}, {transform_indices = @transform_1, window_bounds = array<i64: 1, 4, 4, 8>}, {transform_indices = @transform_2, window_bounds = array<i64: 1, 4, 1, 8>}, {transform_indices = @transform_3, window_bounds = array<i64: 1, 3, 7>}, {transform_indices = @transform_4, window_bounds = array<i64: 1, 3, 4, 8>}, {transform_indices = @transform_5, window_bounds = array<i64: 1, 4, 4, 8>}]} {
    %c0 = arith.constant 0 : index
    %c0_0 = arith.constant 0 : index
    %c0_1 = arith.constant 0 : index
    %c0_2 = arith.constant 0 : index
    %0 = vector.load %arg3[%c0, %c0_0, %c0_1, %c0_2] : memref<1x4x1x8xf32, #tpu.memory_space<vmem>>, vector<1x4x1x8xf32>
    %1 = vector.shape_cast %0 : vector<1x4x1x8xf32> to vector<4x1x8xf32>
    %2 = vector.extract_strided_slice %1 {offsets = [0, 0, 0], sizes = [1, 1, 8], strides = [1, 1, 1]} : vector<4x1x8xf32> to vector<1x1x8xf32>
    %3 = vector.shape_cast %2 : vector<1x1x8xf32> to vector<1x8xf32>
    %4 = vector.extract_strided_slice %1 {offsets = [1, 0, 0], sizes = [1, 1, 8], strides = [1, 1, 1]} : vector<4x1x8xf32> to vector<1x1x8xf32>
    %5 = vector.shape_cast %4 : vector<1x1x8xf32> to vector<1x8xf32>
    %cst = arith.constant 0.000000e+00 : f32
    %6 = vector.broadcast %cst : f32 to vector<1x8xf32>
    %7 = arith.subf %6, %5 : vector<1x8xf32>
    %8 = vector.extract_strided_slice %1 {offsets = [2, 0, 0], sizes = [1, 1, 8], strides = [1, 1, 1]} : vector<4x1x8xf32> to vector<1x1x8xf32>
    %9 = vector.shape_cast %8 : vector<1x1x8xf32> to vector<1x8xf32>
    %cst_3 = arith.constant 0.000000e+00 : f32
    %10 = vector.broadcast %cst_3 : f32 to vector<1x8xf32>
    %11 = arith.subf %10, %9 : vector<1x8xf32>
    %12 = vector.extract_strided_slice %1 {offsets = [3, 0, 0], sizes = [1, 1, 8], strides = [1, 1, 1]} : vector<4x1x8xf32> to vector<1x1x8xf32>
    %13 = vector.shape_cast %12 : vector<1x1x8xf32> to vector<1x8xf32>
    %cst_4 = arith.constant 0.000000e+00 : f32
    %14 = vector.broadcast %cst_4 : f32 to vector<1x8xf32>
    %15 = arith.subf %14, %13 : vector<1x8xf32>
    %c0_5 = arith.constant 0 : index
    %c0_6 = arith.constant 0 : index
    %c0_7 = arith.constant 0 : index
    %c0_8 = arith.constant 0 : index
    %16 = vector.load %arg1[%c0_5, %c0_6, %c0_7, %c0_8] : memref<1x3x4x8xf32, #tpu.memory_space<vmem>>, vector<1x3x4x8xf32>
    %17 = vector.shape_cast %16 : vector<1x3x4x8xf32> to vector<3x4x8xf32>
    %18 = vector.extract_strided_slice %17 {offsets = [0, 0, 0], sizes = [1, 4, 8], strides = [1, 1, 1]} : vector<3x4x8xf32> to vector<1x4x8xf32>
    %19 = vector.shape_cast %18 : vector<1x4x8xf32> to vector<4x8xf32>
    %20 = vector.extract_strided_slice %17 {offsets = [1, 0, 0], sizes = [1, 4, 8], strides = [1, 1, 1]} : vector<3x4x8xf32> to vector<1x4x8xf32>
    %21 = vector.shape_cast %20 : vector<1x4x8xf32> to vector<4x8xf32>
    %22 = vector.extract_strided_slice %17 {offsets = [2, 0, 0], sizes = [1, 4, 8], strides = [1, 1, 1]} : vector<3x4x8xf32> to vector<1x4x8xf32>
    %23 = vector.shape_cast %22 : vector<1x4x8xf32> to vector<4x8xf32>
    %24 = vector.broadcast %11 : vector<1x8xf32> to vector<4x8xf32>
    %25 = arith.mulf %24, %23 : vector<4x8xf32>
    %26 = vector.broadcast %15 : vector<1x8xf32> to vector<4x8xf32>
    %27 = arith.mulf %26, %21 : vector<4x8xf32>
    %28 = arith.subf %25, %27 : vector<4x8xf32>
    %cst_9 = arith.constant 2.000000e+00 : f32
    %29 = vector.broadcast %cst_9 : f32 to vector<4x8xf32>
    %30 = arith.mulf %29, %28 : vector<4x8xf32>
    %31 = vector.broadcast %15 : vector<1x8xf32> to vector<4x8xf32>
    %32 = arith.mulf %31, %19 : vector<4x8xf32>
    %33 = vector.broadcast %7 : vector<1x8xf32> to vector<4x8xf32>
    %34 = arith.mulf %33, %23 : vector<4x8xf32>
    %35 = arith.subf %32, %34 : vector<4x8xf32>
    %cst_10 = arith.constant 2.000000e+00 : f32
    %36 = vector.broadcast %cst_10 : f32 to vector<4x8xf32>
    %37 = arith.mulf %36, %35 : vector<4x8xf32>
    %38 = vector.broadcast %7 : vector<1x8xf32> to vector<4x8xf32>
    %39 = arith.mulf %38, %21 : vector<4x8xf32>
    %40 = vector.broadcast %11 : vector<1x8xf32> to vector<4x8xf32>
    %41 = arith.mulf %40, %19 : vector<4x8xf32>
    %42 = arith.subf %39, %41 : vector<4x8xf32>
    %cst_11 = arith.constant 2.000000e+00 : f32
    %43 = vector.broadcast %cst_11 : f32 to vector<4x8xf32>
    %44 = arith.mulf %43, %42 : vector<4x8xf32>
    %45 = vector.broadcast %3 : vector<1x8xf32> to vector<4x8xf32>
    %46 = arith.mulf %45, %30 : vector<4x8xf32>
    %47 = arith.addf %19, %46 : vector<4x8xf32>
    %48 = vector.broadcast %11 : vector<1x8xf32> to vector<4x8xf32>
    %49 = arith.mulf %48, %44 : vector<4x8xf32>
    %50 = vector.broadcast %15 : vector<1x8xf32> to vector<4x8xf32>
    %51 = arith.mulf %50, %37 : vector<4x8xf32>
    %52 = arith.subf %49, %51 : vector<4x8xf32>
    %53 = arith.addf %47, %52 : vector<4x8xf32>
    %54 = vector.broadcast %3 : vector<1x8xf32> to vector<4x8xf32>
    %55 = arith.mulf %54, %37 : vector<4x8xf32>
    %56 = arith.addf %21, %55 : vector<4x8xf32>
    %57 = vector.broadcast %15 : vector<1x8xf32> to vector<4x8xf32>
    %58 = arith.mulf %57, %30 : vector<4x8xf32>
    %59 = vector.broadcast %7 : vector<1x8xf32> to vector<4x8xf32>
    %60 = arith.mulf %59, %44 : vector<4x8xf32>
    %61 = arith.subf %58, %60 : vector<4x8xf32>
    %62 = arith.addf %56, %61 : vector<4x8xf32>
    %63 = vector.broadcast %3 : vector<1x8xf32> to vector<4x8xf32>
    %64 = arith.mulf %63, %44 : vector<4x8xf32>
    %65 = arith.addf %23, %64 : vector<4x8xf32>
    %66 = vector.broadcast %7 : vector<1x8xf32> to vector<4x8xf32>
    %67 = arith.mulf %66, %37 : vector<4x8xf32>
    %68 = vector.broadcast %11 : vector<1x8xf32> to vector<4x8xf32>
    %69 = arith.mulf %68, %30 : vector<4x8xf32>
    %70 = arith.subf %67, %69 : vector<4x8xf32>
    %71 = arith.addf %65, %70 : vector<4x8xf32>
    %c0_12 = arith.constant 0 : index
    %c0_13 = arith.constant 0 : index
    %c0_14 = arith.constant 0 : index
    %c0_15 = arith.constant 0 : index
    %72 = vector.load %arg2[%c0_12, %c0_13, %c0_14, %c0_15] : memref<1x4x4x8xf32, #tpu.memory_space<vmem>>, vector<1x4x4x8xf32>
    %73 = vector.shape_cast %72 : vector<1x4x4x8xf32> to vector<4x4x8xf32>
    %74 = vector.extract_strided_slice %73 {offsets = [0, 0, 0], sizes = [1, 4, 8], strides = [1, 1, 1]} : vector<4x4x8xf32> to vector<1x4x8xf32>
    %75 = vector.shape_cast %74 : vector<1x4x8xf32> to vector<4x8xf32>
    %76 = vector.extract_strided_slice %73 {offsets = [1, 0, 0], sizes = [1, 4, 8], strides = [1, 1, 1]} : vector<4x4x8xf32> to vector<1x4x8xf32>
    %77 = vector.shape_cast %76 : vector<1x4x8xf32> to vector<4x8xf32>
    %78 = vector.extract_strided_slice %73 {offsets = [2, 0, 0], sizes = [1, 4, 8], strides = [1, 1, 1]} : vector<4x4x8xf32> to vector<1x4x8xf32>
    %79 = vector.shape_cast %78 : vector<1x4x8xf32> to vector<4x8xf32>
    %80 = vector.extract_strided_slice %73 {offsets = [3, 0, 0], sizes = [1, 4, 8], strides = [1, 1, 1]} : vector<4x4x8xf32> to vector<1x4x8xf32>
    %81 = vector.shape_cast %80 : vector<1x4x8xf32> to vector<4x8xf32>
    %82 = vector.broadcast %3 : vector<1x8xf32> to vector<4x8xf32>
    %83 = arith.mulf %82, %75 : vector<4x8xf32>
    %84 = vector.broadcast %7 : vector<1x8xf32> to vector<4x8xf32>
    %85 = arith.mulf %84, %77 : vector<4x8xf32>
    %86 = arith.subf %83, %85 : vector<4x8xf32>
    %87 = vector.broadcast %11 : vector<1x8xf32> to vector<4x8xf32>
    %88 = arith.mulf %87, %79 : vector<4x8xf32>
    %89 = arith.subf %86, %88 : vector<4x8xf32>
    %90 = vector.broadcast %15 : vector<1x8xf32> to vector<4x8xf32>
    %91 = arith.mulf %90, %81 : vector<4x8xf32>
    %92 = arith.subf %89, %91 : vector<4x8xf32>
    %93 = vector.broadcast %3 : vector<1x8xf32> to vector<4x8xf32>
    %94 = arith.mulf %93, %77 : vector<4x8xf32>
    %95 = vector.broadcast %7 : vector<1x8xf32> to vector<4x8xf32>
    %96 = arith.mulf %95, %75 : vector<4x8xf32>
    %97 = arith.addf %94, %96 : vector<4x8xf32>
    %98 = vector.broadcast %11 : vector<1x8xf32> to vector<4x8xf32>
    %99 = arith.mulf %98, %81 : vector<4x8xf32>
    %100 = arith.addf %97, %99 : vector<4x8xf32>
    %101 = vector.broadcast %15 : vector<1x8xf32> to vector<4x8xf32>
    %102 = arith.mulf %101, %79 : vector<4x8xf32>
    %103 = arith.subf %100, %102 : vector<4x8xf32>
    %104 = vector.broadcast %3 : vector<1x8xf32> to vector<4x8xf32>
    %105 = arith.mulf %104, %79 : vector<4x8xf32>
    %106 = vector.broadcast %7 : vector<1x8xf32> to vector<4x8xf32>
    %107 = arith.mulf %106, %81 : vector<4x8xf32>
    %108 = arith.subf %105, %107 : vector<4x8xf32>
    %109 = vector.broadcast %11 : vector<1x8xf32> to vector<4x8xf32>
    %110 = arith.mulf %109, %75 : vector<4x8xf32>
    %111 = arith.addf %108, %110 : vector<4x8xf32>
    %112 = vector.broadcast %15 : vector<1x8xf32> to vector<4x8xf32>
    %113 = arith.mulf %112, %77 : vector<4x8xf32>
    %114 = arith.addf %111, %113 : vector<4x8xf32>
    %115 = vector.broadcast %3 : vector<1x8xf32> to vector<4x8xf32>
    %116 = arith.mulf %115, %81 : vector<4x8xf32>
    %117 = vector.broadcast %7 : vector<1x8xf32> to vector<4x8xf32>
    %118 = arith.mulf %117, %79 : vector<4x8xf32>
    %119 = arith.addf %116, %118 : vector<4x8xf32>
    %120 = vector.broadcast %11 : vector<1x8xf32> to vector<4x8xf32>
    %121 = arith.mulf %120, %77 : vector<4x8xf32>
    %122 = arith.subf %119, %121 : vector<4x8xf32>
    %123 = vector.broadcast %15 : vector<1x8xf32> to vector<4x8xf32>
    %124 = arith.mulf %123, %75 : vector<4x8xf32>
    %125 = arith.addf %122, %124 : vector<4x8xf32>
    %cst_16 = arith.constant 0.000000e+00 : f32
    %126 = vector.broadcast %cst_16 : f32 to vector<4x8xf32>
    %127 = arith.cmpf olt, %92, %126 : vector<4x8xf32>
    %cst_17 = arith.constant -1.000000e+00 : f32
    %cst_18 = arith.constant 1.000000e+00 : f32
    %128 = vector.broadcast %cst_17 : f32 to vector<4x8xf32>
    %129 = vector.broadcast %cst_18 : f32 to vector<4x8xf32>
    %130 = arith.select %127, %128, %129 : vector<4x8xi1>, vector<4x8xf32>
    %131 = arith.mulf %130, %92 : vector<4x8xf32>
    %c0_19 = arith.constant 0 : index
    %c0_20 = arith.constant 0 : index
    %c0_21 = arith.constant 0 : index
    %c0_22 = arith.constant 0 : index
    %132 = vector.load %arg6[%c0_19, %c0_20, %c0_21, %c0_22] : memref<1x4x4x8xf32, #tpu.memory_space<vmem>>, vector<1x1x4x8xf32>
    %133 = vector.shape_cast %132 : vector<1x1x4x8xf32> to vector<4x8xf32>
    %134 = vector.shape_cast %131 : vector<4x8xf32> to vector<1x1x4x8xf32>
    tpu.vector_store %arg6[%c0_19, %c0_20, %c0_21, %c0_22], %134 {strides = array<i32>} : memref<1x4x4x8xf32, #tpu.memory_space<vmem>>, vector<1x1x4x8xf32>,
    %135 = arith.mulf %130, %103 : vector<4x8xf32>
    %c0_23 = arith.constant 0 : index
    %c1 = arith.constant 1 : index
    %c0_24 = arith.constant 0 : index
    %c0_25 = arith.constant 0 : index
    %136 = vector.load %arg6[%c0_23, %c1, %c0_24, %c0_25] : memref<1x4x4x8xf32, #tpu.memory_space<vmem>>, vector<1x1x4x8xf32>
    %137 = vector.shape_cast %136 : vector<1x1x4x8xf32> to vector<4x8xf32>
    %138 = vector.shape_cast %135 : vector<4x8xf32> to vector<1x1x4x8xf32>
    tpu.vector_store %arg6[%c0_23, %c1, %c0_24, %c0_25], %138 {strides = array<i32>} : memref<1x4x4x8xf32, #tpu.memory_space<vmem>>, vector<1x1x4x8xf32>,
    %139 = arith.mulf %130, %114 : vector<4x8xf32>
    %c0_26 = arith.constant 0 : index
    %c2 = arith.constant 2 : index
    %c0_27 = arith.constant 0 : index
    %c0_28 = arith.constant 0 : index
    %140 = vector.load %arg6[%c0_26, %c2, %c0_27, %c0_28] : memref<1x4x4x8xf32, #tpu.memory_space<vmem>>, vector<1x1x4x8xf32>
    %141 = vector.shape_cast %140 : vector<1x1x4x8xf32> to vector<4x8xf32>
    %142 = vector.shape_cast %139 : vector<4x8xf32> to vector<1x1x4x8xf32>
    tpu.vector_store %arg6[%c0_26, %c2, %c0_27, %c0_28], %142 {strides = array<i32>} : memref<1x4x4x8xf32, #tpu.memory_space<vmem>>, vector<1x1x4x8xf32>,
    %143 = arith.mulf %130, %125 : vector<4x8xf32>
    %c0_29 = arith.constant 0 : index
    %c3 = arith.constant 3 : index
    %c0_30 = arith.constant 0 : index
    %c0_31 = arith.constant 0 : index
    %144 = vector.load %arg6[%c0_29, %c3, %c0_30, %c0_31] : memref<1x4x4x8xf32, #tpu.memory_space<vmem>>, vector<1x1x4x8xf32>
    %145 = vector.shape_cast %144 : vector<1x1x4x8xf32> to vector<4x8xf32>
    %146 = vector.shape_cast %143 : vector<4x8xf32> to vector<1x1x4x8xf32>
    tpu.vector_store %arg6[%c0_29, %c3, %c0_30, %c0_31], %146 {strides = array<i32>} : memref<1x4x4x8xf32, #tpu.memory_space<vmem>>, vector<1x1x4x8xf32>,
    %c0_32 = arith.constant 0 : index
    %c0_33 = arith.constant 0 : index
    %c0_34 = arith.constant 0 : index
    %147 = vector.load %arg4[%c0_32, %c0_33, %c0_34] : memref<1x3x7xf32, #tpu.memory_space<vmem>>, vector<1x3x7xf32>
    %148 = vector.shape_cast %147 : vector<1x3x7xf32> to vector<3x7xf32>
    %149 = vector.extract_strided_slice %148 {offsets = [0, 0], sizes = [1, 7], strides = [1, 1]} : vector<3x7xf32> to vector<1x7xf32>
    %150 = vector.extract_strided_slice %148 {offsets = [1, 0], sizes = [1, 7], strides = [1, 1]} : vector<3x7xf32> to vector<1x7xf32>
    %151 = vector.extract_strided_slice %148 {offsets = [2, 0], sizes = [1, 7], strides = [1, 1]} : vector<3x7xf32> to vector<1x7xf32>
    %152 = vector.extract_strided_slice %3 {offsets = [0, 0], sizes = [1, 7], strides = [1, 1]} : vector<1x8xf32> to vector<1x7xf32>
    %153 = vector.extract_strided_slice %7 {offsets = [0, 0], sizes = [1, 7], strides = [1, 1]} : vector<1x8xf32> to vector<1x7xf32>
    %154 = vector.extract_strided_slice %11 {offsets = [0, 0], sizes = [1, 7], strides = [1, 1]} : vector<1x8xf32> to vector<1x7xf32>
    %155 = vector.extract_strided_slice %15 {offsets = [0, 0], sizes = [1, 7], strides = [1, 1]} : vector<1x8xf32> to vector<1x7xf32>
    %156 = arith.mulf %154, %151 : vector<1x7xf32>
    %157 = arith.mulf %155, %150 : vector<1x7xf32>
    %158 = arith.subf %156, %157 : vector<1x7xf32>
    %cst_35 = arith.constant 2.000000e+00 : f32
    %159 = vector.broadcast %cst_35 : f32 to vector<1x7xf32>
    %160 = arith.mulf %159, %158 : vector<1x7xf32>
    %161 = arith.mulf %155, %149 : vector<1x7xf32>
    %162 = arith.mulf %153, %151 : vector<1x7xf32>
    %163 = arith.subf %161, %162 : vector<1x7xf32>
    %cst_36 = arith.constant 2.000000e+00 : f32
    %164 = vector.broadcast %cst_36 : f32 to vector<1x7xf32>
    %165 = arith.mulf %164, %163 : vector<1x7xf32>
    %166 = arith.mulf %153, %150 : vector<1x7xf32>
    %167 = arith.mulf %154, %149 : vector<1x7xf32>
    %168 = arith.subf %166, %167 : vector<1x7xf32>
    %cst_37 = arith.constant 2.000000e+00 : f32
    %169 = vector.broadcast %cst_37 : f32 to vector<1x7xf32>
    %170 = arith.mulf %169, %168 : vector<1x7xf32>
    %171 = arith.mulf %152, %160 : vector<1x7xf32>
    %172 = arith.addf %149, %171 : vector<1x7xf32>
    %173 = arith.mulf %154, %170 : vector<1x7xf32>
    %174 = arith.mulf %155, %165 : vector<1x7xf32>
    %175 = arith.subf %173, %174 : vector<1x7xf32>
    %176 = arith.addf %172, %175 : vector<1x7xf32>
    %177 = arith.mulf %152, %170 : vector<1x7xf32>
    %178 = arith.addf %151, %177 : vector<1x7xf32>
    %179 = arith.mulf %153, %165 : vector<1x7xf32>
    %180 = arith.mulf %154, %160 : vector<1x7xf32>
    %181 = arith.subf %179, %180 : vector<1x7xf32>
    %182 = arith.addf %178, %181 : vector<1x7xf32>
    %183 = tpu.concatenate %176, %182 in 0 : vector<1x7xf32>, vector<1x7xf32> -> vector<2x7xf32>
    %cst_38 = arith.constant 0.000000e+00 : f32
    %184 = vector.broadcast %cst_38 : f32 to vector<2x1xf32>
    %185 = vector.extract_strided_slice %183 {offsets = [0, 0], sizes = [2, 6], strides = [1, 1]} : vector<2x7xf32> to vector<2x6xf32>
    %186 = tpu.concatenate %184, %185 in 1 : vector<2x1xf32>, vector<2x6xf32> -> vector<2x7xf32>
    %187 = arith.addf %183, %186 : vector<2x7xf32>
    %cst_39 = arith.constant 0.000000e+00 : f32
    %188 = vector.broadcast %cst_39 : f32 to vector<2x2xf32>
    %189 = vector.extract_strided_slice %187 {offsets = [0, 0], sizes = [2, 5], strides = [1, 1]} : vector<2x7xf32> to vector<2x5xf32>
    %190 = tpu.concatenate %188, %189 in 1 : vector<2x2xf32>, vector<2x5xf32> -> vector<2x7xf32>
    %191 = arith.addf %187, %190 : vector<2x7xf32>
    %cst_40 = arith.constant 0.000000e+00 : f32
    %192 = vector.broadcast %cst_40 : f32 to vector<2x4xf32>
    %193 = vector.extract_strided_slice %191 {offsets = [0, 0], sizes = [2, 3], strides = [1, 1]} : vector<2x7xf32> to vector<2x3xf32>
    %194 = tpu.concatenate %192, %193 in 1 : vector<2x4xf32>, vector<2x3xf32> -> vector<2x7xf32>
    %195 = arith.addf %191, %194 : vector<2x7xf32>
    %cst_41 = arith.constant 0.000000e+00 : f32
    %196 = vector.broadcast %cst_41 : f32 to vector<2x1xf32>
    %197 = tpu.concatenate %196, %195 in 1 : vector<2x1xf32>, vector<2x7xf32> -> vector<2x8xf32>
    %198 = vector.extract_strided_slice %53 {offsets = [0, 0], sizes = [1, 1], strides = [1, 1]} : vector<4x8xf32> to vector<1x1xf32>
    %199 = vector.extract_strided_slice %197 {offsets = [0, 0], sizes = [1, 8], strides = [1, 1]} : vector<2x8xf32> to vector<1x8xf32>
    %200 = vector.broadcast %198 : vector<1x1xf32> to vector<1x8xf32>
    %201 = arith.addf %200, %199 : vector<1x8xf32>
    %202 = vector.extract_strided_slice %71 {offsets = [0, 0], sizes = [1, 1], strides = [1, 1]} : vector<4x8xf32> to vector<1x1xf32>
    %203 = vector.extract_strided_slice %197 {offsets = [1, 0], sizes = [1, 8], strides = [1, 1]} : vector<2x8xf32> to vector<1x8xf32>
    %204 = vector.broadcast %202 : vector<1x1xf32> to vector<1x8xf32>
    %205 = arith.addf %204, %203 : vector<1x8xf32>
    %206 = vector.broadcast %201 : vector<1x8xf32> to vector<4x8xf32>
    %207 = arith.addf %53, %206 : vector<4x8xf32>
    %c0_42 = arith.constant 0 : index
    %c0_43 = arith.constant 0 : index
    %c0_44 = arith.constant 0 : index
    %c0_45 = arith.constant 0 : index
    %208 = vector.load %arg5[%c0_42, %c0_43, %c0_44, %c0_45] : memref<1x3x4x8xf32, #tpu.memory_space<vmem>>, vector<1x1x4x8xf32>
    %209 = vector.shape_cast %208 : vector<1x1x4x8xf32> to vector<4x8xf32>
    %210 = vector.shape_cast %207 : vector<4x8xf32> to vector<1x1x4x8xf32>
    tpu.vector_store %arg5[%c0_42, %c0_43, %c0_44, %c0_45], %210 {strides = array<i32>} : memref<1x3x4x8xf32, #tpu.memory_space<vmem>>, vector<1x1x4x8xf32>,
    %c0_46 = arith.constant 0 : index
    %c1_47 = arith.constant 1 : index
    %c0_48 = arith.constant 0 : index
    %c0_49 = arith.constant 0 : index
    %211 = vector.load %arg5[%c0_46, %c1_47, %c0_48, %c0_49] : memref<1x3x4x8xf32, #tpu.memory_space<vmem>>, vector<1x1x4x8xf32>
    %212 = vector.shape_cast %211 : vector<1x1x4x8xf32> to vector<4x8xf32>
    %213 = vector.shape_cast %62 : vector<4x8xf32> to vector<1x1x4x8xf32>
    tpu.vector_store %arg5[%c0_46, %c1_47, %c0_48, %c0_49], %213 {strides = array<i32>} : memref<1x3x4x8xf32, #tpu.memory_space<vmem>>, vector<1x1x4x8xf32>,
    %214 = vector.broadcast %205 : vector<1x8xf32> to vector<4x8xf32>
    %215 = arith.addf %71, %214 : vector<4x8xf32>
    %c0_50 = arith.constant 0 : index
    %c2_51 = arith.constant 2 : index
    %c0_52 = arith.constant 0 : index
    %c0_53 = arith.constant 0 : index
    %216 = vector.load %arg5[%c0_50, %c2_51, %c0_52, %c0_53] : memref<1x3x4x8xf32, #tpu.memory_space<vmem>>, vector<1x1x4x8xf32>
    %217 = vector.shape_cast %216 : vector<1x1x4x8xf32> to vector<4x8xf32>
    %218 = vector.shape_cast %215 : vector<4x8xf32> to vector<1x1x4x8xf32>
    tpu.vector_store %arg5[%c0_50, %c2_51, %c0_52, %c0_53], %218 {strides = array<i32>} : memref<1x3x4x8xf32, #tpu.memory_space<vmem>>, vector<1x1x4x8xf32>,
    return
  }
  func.func @transform_0(%arg0: i32) -> (i32, i32, i32, i32) {
    %c0_i32 = arith.constant 0 : i32
    %c0_i32_0 = arith.constant 0 : i32
    %c0_i32_1 = arith.constant 0 : i32
    %c0_i32_2 = arith.constant 0 : i32
    return %arg0, %c0_i32, %c0_i32_0, %c0_i32_1 : i32, i32, i32, i32
  }
  func.func @transform_1(%arg0: i32) -> (i32, i32, i32, i32) {
    %c0_i32 = arith.constant 0 : i32
    %c0_i32_0 = arith.constant 0 : i32
    %c0_i32_1 = arith.constant 0 : i32
    %c0_i32_2 = arith.constant 0 : i32
    return %arg0, %c0_i32, %c0_i32_0, %c0_i32_1 : i32, i32, i32, i32
  }
  func.func @transform_2(%arg0: i32) -> (i32, i32, i32, i32) {
    %c0_i32 = arith.constant 0 : i32
    %c0_i32_0 = arith.constant 0 : i32
    %c0_i32_1 = arith.constant 0 : i32
    %c0_i32_2 = arith.constant 0 : i32
    return %arg0, %c0_i32, %c0_i32_0, %c0_i32_1 : i32, i32, i32, i32
  }
  func.func @transform_3(%arg0: i32) -> (i32, i32, i32) {
    %c0_i32 = arith.constant 0 : i32
    %c0_i32_0 = arith.constant 0 : i32
    %c0_i32_1 = arith.constant 0 : i32
    return %arg0, %c0_i32, %c0_i32_0 : i32, i32, i32
  }
  func.func @transform_4(%arg0: i32) -> (i32, i32, i32, i32) {
    %c0_i32 = arith.constant 0 : i32
    %c0_i32_0 = arith.constant 0 : i32
    %c0_i32_1 = arith.constant 0 : i32
    %c0_i32_2 = arith.constant 0 : i32
    return %arg0, %c0_i32, %c0_i32_0, %c0_i32_1 : i32, i32, i32, i32
  }
  func.func @transform_5(%arg0: i32) -> (i32, i32, i32, i32) {
    %c0_i32 = arith.constant 0 : i32
    %c0_i32_0 = arith.constant 0 : i32
    %c0_i32_1 = arith.constant 0 : i32
    %c0_i32_2 = arith.constant 0 : i32
    return %arg0, %c0_i32, %c0_i32_0, %c0_i32_1 : i32, i32, i32, i32
  }
}

</mosaic_0001>

<bundles_post_ra>
// kernel: batch_unprocess_data_v2.1
= control target key start
LH: loop header
LB: loop body
LE: loop exit
PB: predicated region body
PF: predicated region fallthrough
CT: control target
= control target key end

     0   :  { %11 = vsyncpa [#allocation3], 0  ;;  %s1022_s0 = inlined_call_operand.vmem [shape: f32[2,3,4,8], index: 0, kind: input, shape index: {}]   ;;  %s1023_s1 = inlined_call_operand.vmem [shape: f32[2,4,4,8], index: 1, kind: input, shape index: {}]   ;;  %s1024_s2 = inlined_call_operand.vmem [shape: f32[2,4,1,8], index: 2, kind: input, shape index: {}]   ;;  %s1025_s3 = inlined_call_operand.vmem [shape: f32[2,3,7], index: 3, kind: input, shape index: {}]   ;;  %s1026_s4 = inlined_call_operand.hbm [shape: f32[2,3,4,8], index: 4, kind: output, shape index: {0}]   ;;  %s1027_s5 = inlined_call_operand.vmem [shape: f32[2,4,4,8], index: 5, kind: output, shape index: {1}]  }
   0x1   :  { %13 = vsyncpa [#allocation3 + $0x1], 0  ;;  %s843_s18 = smov 0   ;;  %s845_s19 = smov 0  }
   0x2   :  { %s847_s20 = smov 0   ;;  %s849_s21 = smov 0  }
   0x3 LB: > { %s864_s22 = sadd.s32 4294967295, %s803_s21   ;;  %s669_s23 = sadd.s32 4294967294, %s803_s21   ;;  %s803_s21 = sphi %s849_s21, %s1033_s21   ;;  %s799_s20 = sphi %s847_s20, %s1032_s20   ;;  %s795_s19 = sphi %s845_s19, %s1031_s19   ;;  %s791_s18 = sphi %s843_s18, %s1030_s18  }
   0x4   : > { %s868_s24 = sadd.s32 1, %s803_s21   ;;  %s130_s25 = sadd.s32 1, %s799_s20 }
   0x5   : > { %s127_s26 = ssub.s32 %s803_s21, %s868_s24  ;;  %p140_p0 = scmp.ne.s32.totalorder %s799_s20, %s795_s19 }
   0x6   : > { %p128_p1 = scmp.eq.s32.totalorder %s127_s26, 0  ;;  %p141_p2 = scmp.eq.s32.totalorder %s864_s22, 1 }
   0x7   : > { %p146_p3 = scmp.ne.s32.totalorder %s795_s19, %s791_s18  ;;  %p147_p4 = scmp.eq.s32.totalorder %s669_s23, 1 }
   0x8   : > { %s879_s27 = scalar_select %p128_p1, %s799_s20, %s130_s25  }
   0x9   : > { %p881_p5 = por %p141_p2, %p140_p0  ;;  %p885_p6 = por %p147_p4, %p146_p3 }
   0xa   : > { %p672_p7 = scmp.ge.s32.totalorder %s803_s21, 1  ;;  %p221_p8 = scmp.lt.s32.totalorder %s803_s21, 3 }
   0xc   : > { %p222_p9 = pnand %p672_p7, %p221_p8 }
   0xd   : > { %p267_p10 = scmp.lt.s32.totalorder (!%p222_p9), %s864_s22, 1  ;;  %v301_v0 = vlaneseq (!%p222_p9)  ;;  %v805_v1 = vmov (!%p222_p9), 1966171168   ;;  %vm466_vm0 = vcmask (!%p222_p9), 1040384   ;;  %s806_s13 = smov (!%p222_p9), 1   ;;  %v807_v51 = vmov (!%p222_p9), 0  }
   0xe   : > { %225 = sbr.rel (%p222_p9) target bundleno = 544 (0x220), region = 36  ;;  %v403_v2 = vunpack.c.l.s4 (!%p222_p9), %v805_v1  ;;  %739 = vset.pattern.permute.xlu1 (!%p222_p9), %v807_v51  ;;  %740 = vset.pattern.permute.xlu0 (!%p222_p9), %v807_v51  ;;  %vm472_vm1 = vcmask (!%p222_p9), 7168   ;;  %s808_s23 = smov (!%p222_p9), 2   ;;  %vm479_vm3 = vcmask (!%p222_p9), 15360   ;;  %vm389_vm4 = vcmask (!%p222_p9), 60416  }
   0xf   : > { %v302_v3 = vshrl.u32 (!%p222_p9), %v301_v0, 7  ;;  %s810_s8 = smov (!%p222_p9), 4   ;;  %vm486_vm5 = vcmask (!%p222_p9), 31744   ;;  %s811_s26 = smov (!%p222_p9), [#allocation2]  }
  0x10   : > { %v404_v4 = vunpack.c.0.s8 (!%p222_p9), %v403_v2 }
  0x11   : > { %v902_v28 = vsub.s32 (!%p222_p9), 0, %v302_v3 }
  0x12   : > { %v407_v5 = vsub.s32 (!%p222_p9), %v404_v4, %v302_v3 }
  0x15   : > { %s893_s30 = scalar_select %p267_p10, %s864_s22, 1 }
  0x17   : > { %s676_s6 = sshll.u32 %s893_s30, 2  ;;  %s691_s14 = smul.u32 12, %s893_s30 }
  0x18   : > { %s280_s9 = scalar_lea.vmem %s1024_s2, %s676_s6  ;;  %s284_s12 = scalar_lea.vmem %s1025_s3, %s676_s6 }
  0x19   : > { %v292_v6 = vld [vmem:[%s280_s9 + $0x2] sm:$0x1]  ;;  %v291_v7 = vld [vmem:[%s280_s9 + $0x1] sm:$0x1]  ;;  %v293_v8 = vld [vmem:[%s280_s9 + $0x3] sm:$0x1]  ;;  %s271_s17 = scalar_lea.vmem %s1022_s0, %s691_s14 }
  0x1a   : > { %v400_v9 = vld [vmem:[%s284_s12] sm:$0x7]  ;;  %v295_v10 = vsub.f32 0.0, %v292_v6  ;;  %v296_v11 = vsub.f32 0.0, %v293_v8  ;;  %v294_v13 = vsub.f32 0.0, %v291_v7  ;;  %s688_s25 = sshll.u32 %s893_s30, 4 }
  0x1b   : > { %v408_v12 = vrot.slane %v400_v9, %v407_v5  ;;  %v290_v27 = vld [vmem:[%s280_s9] sm:$0x1]  ;;  %v298_v53 = vld [vmem:[%s271_s17 + $0x4] sm:$0xf]  ;;  %v299_v54 = vld [vmem:[%s271_s17 + $0x8] sm:$0xf]  ;;  %s276_s7 = scalar_lea.vmem %s1023_s1, %s688_s25  ;;  %s289_s11 = scalar_lea.vmem %s1027_s5, %s688_s25 }
  0x1c   : > { %v431_v18 = vmul.f32 %v400_v9, %v296_v11  ;;  %v436_v19 = vmul.f32 %v400_v9, %v295_v10  ;;  %v908_v48 = vrot.slane %v295_v10, %v902_v28  ;;  %v911_v49 = vrot.slane %v296_v11, %v902_v28  ;;  %v297_v52 = vld [vmem:[%s271_s17] sm:$0xf]  ;;  %s257_s12 = sand.u32 1, %s795_s19   ;;  %s692_s30 = smul.u32 192, %s864_s22 }
  0x1d   : > { %v415_v14 = vrot.slane %v408_v12, %v407_v5  ;;  %v419_v15 = vcombine.high %v408_v12, %v408_v12  ;;  %v321_v50 = vrot.slane %v294_v13, %v902_v28  ;;  %v334_v61 = vrot.slane %v290_v27, %v902_v28  ;;  %s690_s14 = smul.u32 12, %s257_s12  ;;  %s980_s22 = scalar_lea.sflag [#allocation3], %s257_s12 }
  0x1e   : > { %v306_v55 = vmul.f32 %v908_v48, %v299_v54  ;;  %v313_v56 = vmul.f32 %v911_v49, %v298_v53  ;;  %v316_v57 = vmul.f32 %v911_v49, %v297_v52  ;;  %v327_v60 = vmul.f32 %v908_v48, %v297_v52  ;;  %s745_s6 = sshll.u32 %s811_s26, 4  ;;  %s746_s6 = int_to_ptr.vmem [resolvable:$false] %s745_s6 }
  0x1f   : > { %v416_v16 = vcombine.high %v415_v14, %v415_v14  ;;  %v426_v17 = vrot.slane %v419_v15, %v407_v5  ;;  %v323_v58 = vmul.f32 %v321_v50, %v299_v54  ;;  %v326_v59 = vmul.f32 %v321_v50, %v298_v53  ;;  %s259_s15 = scalar_lea.vmem [#allocation2], %s690_s14 }
  0x20   : > { %v314_v63 = vsub.f32 %v306_v55, %v313_v56  ;;  %s543_s16 = sshll.u32 %s259_s15, 4  ;;  %s977_s16 = int_to_ptr.vmem [resolvable:$true] %s543_s16 }
  0x21   : > { %v418_v20 = vmul.f32 %v416_v16, %v295_v10  ;;  %v428_v21 = vmul.f32 %v426_v17, %v296_v11  ;;  %v432_v22 = vmul.f32 %v416_v16, %v294_v13  ;;  %v435_v23 = vmul.f32 %v426_v17, %v294_v13  ;;  %s741_s25 = scalar_lea.vmem %s977_s16, 192  ;;  %p748_p0 = scmp.lt.s32.totalorder %s977_s16, %s746_s6 }
  0x22   : > { %v324_v0 = vsub.f32 %v316_v57, %v323_v58  ;;  %v328_v2 = vsub.f32 %v326_v59, %v327_v60  ;;  %v315_v4 = vmul.f32 2.0, %v314_v63  ;;  %p742_p11 = scmp.ne.s32.totalorder %s977_s16, %s741_s25 }
  0x23   : > { %v429_v24 = vsub.f32 %v418_v20, %v428_v21  ;;  %v433_v25 = vsub.f32 %v431_v18, %v432_v22  ;;  %v437_v26 = vsub.f32 %v435_v23, %v436_v19 }
  0x24   : > { %v325_v5 = vmul.f32 2.0, %v324_v0  ;;  %v329_v6 = vmul.f32 2.0, %v328_v2  ;;  %v336_v7 = vmul.f32 %v334_v61, %v315_v4  ;;  %v351_v17 = vmul.f32 %v315_v4, %v908_v48  ;;  %p743_p12 = pnand %p742_p11, %p881_p5 }
  0x25   : > { %v430_v29 = vmul.f32 2.0, %v429_v24  ;;  %v434_v30 = vmul.f32 2.0, %v433_v25  ;;  %v438_v31 = vmul.f32 2.0, %v437_v26  ;;  %v354_v25 = vld [vmem:[%s276_s7] sm:$0xf] }
  0x26   : > { %v339_v8 = vmul.f32 %v325_v5, %v911_v49  ;;  %v345_v12 = vmul.f32 %v329_v6, %v321_v50  ;;  %v350_v14 = vmul.f32 %v325_v5, %v321_v50  ;;  %v337_v15 = vadd.f32 %v336_v7, %v297_v52  ;;  %v355_v26 = vld [vmem:[%s276_s7 + $0x4] sm:$0xf]  ;;  %p744_p13 = pneg %p743_p12 }
  0x27   : > { %v439_v32 = vmul.f32 %v430_v29, %v290_v27  ;;  %v441_v33 = vmul.f32 %v438_v31, %v295_v10  ;;  %v442_v34 = vmul.f32 %v434_v30, %v296_v11  ;;  %v445_v35 = vmul.f32 %v438_v31, %v290_v27  ;;  %v357_v31 = vld [vmem:[%s276_s7 + $0xc] sm:$0xf] }
  0x28   : > { %v453_v36 = vmul.f32 %v434_v30, %v294_v13  ;;  %v454_v37 = vmul.f32 %v430_v29, %v295_v10  ;;  %v344_v10 = vmul.f32 %v315_v4, %v911_v49  ;;  %v338_v11 = vmul.f32 %v329_v6, %v908_v48  ;;  %v356_v30 = vld [vmem:[%s276_s7 + $0x8] sm:$0xf]  ;;  %s747_s7 = scalar_lea.vmem %s746_s6, 384 }
  0x29   : > { %v450_v38 = vrot.slane %v445_v35, %v902_v28  ;;  %v440_v39 = vadd.f32 %v439_v32, %v400_v9  ;;  %v443_v40 = vsub.f32 %v441_v33, %v442_v34  ;;  %v348_v13 = vmul.f32 %v334_v61, %v329_v6  ;;  %p749_p1 = scmp.lt.s32.totalorder %s747_s7, %s741_s25 }
  0x2a   : > { %v455_v41 = vsub.f32 %v453_v36, %v454_v37  ;;  %v340_v18 = vsub.f32 %v338_v11, %v339_v8  ;;  %v346_v19 = vsub.f32 %v344_v10, %v345_v12  ;;  %v352_v21 = vsub.f32 %v350_v14, %v351_v17 }
  0x2b   : > { %v452_v42 = vadd.f32 %v450_v38, %v400_v9  ;;  %v444_v44 = vadd.f32 %v443_v40, %v440_v39  ;;  %v342_v9 = vmul.f32 %v334_v61, %v325_v5  ;;  %v349_v20 = vadd.f32 %v348_v13, %v299_v54  ;;  %p750_p2 = por %p749_p1, %p748_p0 }
  0x2c   : > { %v460_v43 = vrot.slane %v455_v41, %v902_v28  ;;  %v931_v22 = vadd.f32 %v340_v18, %v337_v15  ;;  %v358_v27 = vmul.f32 %v354_v25, %v334_v61  ;;  %v359_v29 = vmul.f32 %v355_v26, %v321_v50 }
  0x2d   : > { %v343_v16 = vadd.f32 %v342_v9, %v298_v53  ;;  %v933_v24 = vadd.f32 %v352_v21, %v349_v20  ;;  %v361_v33 = vmul.f32 %v356_v30, %v908_v48  ;;  %v365_v34 = vmul.f32 %v355_v26, %v334_v61  ;;  %p751_p3 = pnand %p750_p2, %p744_p13 }
  0x2e   : > { %v462_v45 = vadd.f32 %v460_v43, %v452_v42  ;;  %v360_v32 = vsub.f32 %v358_v27, %v359_v29  ;;  %v366_v35 = vmul.f32 %v354_v25, %v321_v50  ;;  %v372_v36 = vmul.f32 %v356_v30, %v334_v61 }
  0x2f   : > { %v347_v23 = vadd.f32 %v346_v19, %v343_v16  ;;  %v373_v37 = vmul.f32 %v357_v31, %v321_v50  ;;  %v379_v38 = vmul.f32 %v357_v31, %v334_v61  ;;  %v380_v39 = vmul.f32 %v356_v30, %v321_v50 }
  0x30   : > { %v464_v46 = vrot.slane %v462_v45, 1  ;;  %v362_v40 = vsub.f32 %v360_v32, %v361_v33  ;;  %v363_v41 = vmul.f32 %v357_v31, %v911_v49  ;;  %v367_v42 = vadd.f32 %v366_v35, %v365_v34 }
  0x31   : > { %v368_v43 = vmul.f32 %v357_v31, %v908_v48  ;;  %v375_v45 = vmul.f32 %v354_v25, %v908_v48  ;;  %v370_v53 = vmul.f32 %v356_v30, %v911_v49  ;;  %v377_v55 = vmul.f32 %v355_v26, %v911_v49  ;;  %683 = vst.msk [vmem:[%s259_s15 + $0x4] sm:$0xf] %vm389_vm4, %v347_v23 }
  0x32   : > { %v467_v47 = vsel %vm466_vm0, %v444_v44, %v464_v46  ;;  %v374_v44 = vsub.f32 %v372_v36, %v373_v37  ;;  %v381_v46 = vadd.f32 %v380_v39, %v379_v38  ;;  %v364_v51 = vsub.f32 %v362_v40, %v363_v41 }
  0x33   : > { %469 = vrot.lane.b32.xlu0 %v467_v47, %s806_s13  ;;  %v369_v52 = vadd.f32 %v368_v43, %v367_v42  ;;  %v384_v56 = vmul.f32 %v354_v25, %v911_v49  ;;  %v809_v61 = vmov 1.0  }
  0x34   : > { %v376_v54 = vadd.f32 %v375_v45, %v374_v44  ;;  %vm386_vm2 = vcmp.lt.f32.partialorder %v364_v51, 0.0 }
  0x35   : > { %v371_v57 = vsub.f32 %v369_v52, %v370_v53 }
  0x36   : > { %v378_v58 = vadd.f32 %v377_v55, %v376_v54 }
  0xa5   : > { %v470_v62 = vpop.permute.xlu0 %469 }
  0xa6   : > { %v473_v1 = vsel %vm472_vm1, 0.0, %v470_v62  ;;  %v387_v62 = vsel %vm386_vm2, -1.0, %v809_v61 }
  0xa7   : > { %v924_v3 = vadd.f32 %v473_v1, %v467_v47  ;;  %v382_v47 = vmul.f32 %v355_v26, %v908_v48  ;;  %v388_v0 = vmul.f32 %v387_v62, %v364_v51  ;;  %v391_v1 = vmul.f32 %v387_v62, %v371_v57 }
  0xa8   : > { %v394_v2 = vmul.f32 %v387_v62, %v378_v58 }
  0xa9   : > { %476 = vrot.lane.b32.xlu0 %v924_v3, %s808_s23  ;;  %v383_v50 = vsub.f32 %v381_v46, %v382_v47  ;;  %390 = vst.msk [vmem:[%s289_s11] sm:$0xf] %vm389_vm4, %v388_v0  ;;  %680 = vst.msk [vmem:[%s289_s11 + $0x4] sm:$0xf] %vm389_vm4, %v391_v1 }
  0xaa   : > { %681 = vst.msk [vmem:[%s289_s11 + $0x8] sm:$0xf] %vm389_vm4, %v394_v2 }
  0xab   : > { %v385_v59 = vadd.f32 %v384_v56, %v383_v50 }
  0xad   : > { %502 = vperm.xlu0 %740, %v933_v24   ;;  %v397_v4 = vmul.f32 %v387_v62, %v385_v59 }
  0xaf   : > { %682 = vst.msk [vmem:[%s289_s11 + $0xc] sm:$0xf] %vm389_vm4, %v397_v4 }
 0x11b   : > { %v477_v60 = vpop.permute.xlu0 %476 }
 0x11c   : > { %v480_v48 = vsel %vm479_vm3, 0.0, %v477_v60 }
 0x11d   : > { %v481_v63 = vadd.f32 %v480_v48, %v924_v3 }
 0x11f   : > { %483 = vrot.lane.b32.xlu1 %v481_v63, %s810_s8 }
 0x123   : > { %496 = vperm.xlu1 %739, %v931_v22  }
 0x12c   : > { %v503_v9 = vpop.permute.xlu0 %502 }
 0x191   : > { %v484_v49 = vpop.permute.xlu1 %483 }
 0x192   : > { %v487_v3 = vsel %vm486_vm5, 0.0, %v484_v49 }
 0x193   : > { %v488_v5 = vadd.f32 %v487_v3, %v481_v63 }
 0x195   : > { %490 = vrot.lane.b32.xlu1 %v488_v5, %s806_s13  ;;  %s973_s13 = scalar_lea.hbm %s1026_s4, %s692_s30 }
 0x1a2   : > { %v497_v6 = vpop.permute.xlu1 %496 }
 0x207   : > { %v491_v7 = vpop.permute.xlu1 %490 }
 0x208   : > { %v493_v8 = vsel %vm472_vm1, 0.0, %v491_v7 }
 0x209   : > { %v499_v10 = vadd.f32 %v497_v6, %v493_v8  ;;  %v506_v11 = vrot.slane %v493_v8, 1 }
 0x20b   : > { %v512_v12 = vrot.slane %v499_v10, %v902_v28  ;;  %v508_v13 = vadd.f32 %v506_v11, %v503_v9 }
 0x20d   : > { %v513_v14 = vadd.f32 %v512_v12, %v931_v22  ;;  %v520_v15 = vrot.slane %v508_v13, %v902_v28 }
 0x20f   : > { %514 = vst.msk [vmem:[%s259_s15] sm:$0xf] %vm389_vm4, %v513_v14  ;;  %v521_v16 = vadd.f32 %v520_v15, %v933_v24 }
 0x211   : > { %684 = vst.msk [vmem:[%s259_s15 + $0x8] sm:$0xf] %vm389_vm4, %v521_v16 }
 0x212   : > { %754 = shalt.err (!%p751_p3)
}
 0x213   : > { %s755_s9 = scalar_lea.hbm %s973_s13, 192  ;;  %s759_s12 = scalar_lea.hbm %s1026_s4, 384 }
 0x214   : > { %p756_p4 = scmp.ne.s32.totalorder %s973_s13, %s755_s9  ;;  %p760_p9 = scmp.lt.u32.totalorder %s973_s13, %s1026_s4 }
 0x215   : > { %p761_p10 = scmp.lt.u32.totalorder %s759_s12, %s755_s9  ;;  %p763_p12 = scmp.lt.u32.totalorder %s755_s9, %s973_s13 }
 0x216   : > { %p757_p7 = pnand %p756_p4, %p881_p5 }
 0x217   : > { %p762_p11 = por %p761_p10, %p760_p9 }
 0x218   : > { %p758_p8 = pneg %p757_p7 }
 0x219   : > { %p764_p13 = por %p763_p12, %p762_p11 }
 0x21b   : > { %p765_p0 = pnand %p764_p13, %p758_p8 }
 0x21d   : > { %768 = shalt.err (!%p765_p0)
}
 0x21e   : > { %s812_s30 = smov 64  }
 0x21f   : > { %693 = dma.vmem_to_hbm [thread:$0]  (%p881_p5), %s977_s16, 192, %s973_s13, %s980_s22, %s812_s30, %s812_s30, %s810_s8  }
 0x220 PF: > { %p699_p1 = scmp.ge.s32.totalorder %s803_s21, 2  ;;  %s561_s17 = sand.u32 1, %s791_s18  }
 0x221   : > { %s562_s23 = scalar_lea.sflag [#allocation3], %s561_s17 }
 0x222   : > { %p696_p2 = pnand %p699_p1, %p885_p6 }
 0x224   : > { %786 = dma.done.wait (!%p696_p2), %s562_s23, 192  }
 0x225   : > { %788 = vsyncadd (!%p696_p2), %s562_s23, 4294967104  ;;  %p16_p3 = scmp.ge.s32.totalorder %s868_s24, 4   ;;  %s1030_s18 = smov %s795_s19 }
 0x226   : > { %s1031_s19 = smov %s799_s20  ;;  %s1032_s20 = smov %s879_s27 }
 0x227   : > { %s1033_s21 = smov %s868_s24  ;;  %18 = sbr.rel (!%p16_p3) target bundleno = 3 (0x3), region = 97 }
 0x22e   :  { %575 = vsyncpa [#allocation3], 1 }
 0x22f   :  { %577 = vsyncpa [#allocation3 + $0x1], 1 }

</bundles_post_ra>
